<compile_context>
chip_gen: v7x
topology: tpu7x:2x2x1
jax: 0.10.0
libtpu: 0.0.40
codegen_flags: <defaults>
</compile_context>

<pallas_src>
import math

import jax
import jax.numpy as jnp
from jax.experimental import pallas as pl
from jax.experimental.pallas import tpu as pltpu


def quad_kernel(params_ref, x_ref, o_ref):
    # params_ref lives in SMEM: [a, b, c] f32 scalars (matches the 1-element
    # nn.Parameters broadcasting over x).
    a = params_ref[0]
    b = params_ref[1]
    c = params_ref[2]
    x = x_ref[...].astype(jnp.float32)
    # Horner form: one fewer vmul per vreg than a*x*x + b*x + c.
    o_ref[...] = ((a * x + b) * x + c).astype(o_ref.dtype)


def _round_up(v: int, m: int) -> int:
    return -(-v // m) * m


def _xla_forward(x: jax.Array, params: jax.Array) -> jax.Array:
    """Fused XLA path (tiny / pathological shapes). f32 math, output keeps x.dtype."""
    xf = x.astype(jnp.float32)
    return ((params[0] * xf + params[1]) * xf + params[2]).astype(x.dtype)


def _default_block_bytes() -> int:
    # ~8 MiB blocks on v7x (3.2 TB/s HBM -> short steps, amortize the ~0.35 us
    # per-step pipeline overhead), ~4 MiB on v5e/v6e.
    try:
        kind = jax.devices()[0].device_kind.lower()
    except Exception:
        kind = ""
    return (8 << 20) if ("v7" in kind or "7x" in kind) else (4 << 20)


def _free_2d_view(x: jax.Array, total: int):
    """A copy-free 2D lane view of x, or None if no good one exists."""
    # Prefer lane-dense widths (unmasked full-width vector stores).
    for c in (1024, 512, 256, 128):
        if total % c == 0:
            return x.reshape(total // c, c)
    # Fall back to collapsing leading dims; block last dim == full array dim is a
    # legal BlockSpec even when not a multiple of 128 (masked lane stores, no copies).
    if x.ndim >= 2 and x.shape[-1] >= 128:
        return x.reshape(-1, x.shape[-1])
    return None


def quadratic_regression(
    x: jax.Array,
    params: jax.Array,
    *,
    min_pallas_bytes: int = 2 << 20,      # below this, fused XLA wins (launch overhead)
    target_block_bytes: int | None = None,
    core_parallel: bool = False,          # opt-in: split grid across v7x's 2 TCs
    interpret: bool = False,
) -> jax.Array:
    """y = a * x**2 + b * x + c, elementwise over x. params = [a, b, c] (f32[3])."""
    params = jnp.asarray(params, dtype=jnp.float32).reshape(3)
    orig_shape = x.shape
    total = math.prod(orig_shape) if orig_shape else 1
    itemsize = jnp.dtype(x.dtype).itemsize

    if total == 0 or total * itemsize < min_pallas_bytes:
        return _xla_forward(x, params)

    x2d = _free_2d_view(x, total)
    if x2d is None:
        # TODO(synk): truly ragged shapes with a tiny last dim could be handled with a
        # manual bounded-tail DMA (memory_space=pl.ANY); fused XLA is copy-free and at
        # the HBM roofline for this elementwise op, so we fall back instead.
        return _xla_forward(x, params)

    rows, C = x2d.shape
    sub = {4: 8, 2: 16, 1: 32}.get(itemsize, 8)   # min sublane multiple per dtype
    if target_block_bytes is None:
        target_block_bytes = _default_block_bytes()

    # Row-block: capped by the block-byte target, but also small enough that the grid
    # has ~8 steps so input/output DMA of neighbouring steps overlap (pipelining).
    r_cap = max(sub, (target_block_bytes // (C * itemsize)) // sub * sub)
    r_fair = max(sub, _round_up(pl.cdiv(rows, 8), sub))
    R = int(min(r_cap, r_fair))
    block_bytes = R * C * itemsize
    if block_bytes > (32 << 20):
        # Pathologically wide last dim: even one sublane-group of rows blows VMEM.
        return _xla_forward(x, params)

    grid = (pl.cdiv(rows, R),)   # last block may be partial; Pallas masks the edge.

    # Budget: 2 buffers (double-buffering) x 2 arrays (x in + y out) x block + headroom.
    # Under v7x's 64 MiB physical VMEM; lifts v5e's 16 MiB default scoped limit.
    vmem_limit = int(min(4 * block_bytes + (4 << 20), 48 << 20))

    cost = pl.CostEstimate(
        flops=4 * total,                              # 2 mul + 2 add per element (Horner)
        transcendentals=0,
        bytes_accessed=2 * total * itemsize + 3 * 4,  # x in + y out + params
    )

    dim_sem = (pltpu.CORE_PARALLEL,) if core_parallel else ("parallel",)

    y2d = pl.pallas_call(
        quad_kernel,
        out_shape=jax.ShapeDtypeStruct((rows, C), x.dtype),
        grid=grid,
        in_specs=[
            pl.BlockSpec(memory_space=pltpu.SMEM),    # [a, b, c] scalars
            pl.BlockSpec((R, C), lambda i: (i, 0)),   # streaming x tile
        ],
        out_specs=pl.BlockSpec((R, C), lambda i: (i, 0)),
        compiler_params=pltpu.CompilerParams(
            dimension_semantics=dim_sem,
            vmem_limit_bytes=vmem_limit,
        ),
        cost_estimate=cost,
        interpret=interpret,
    )(params, x2d)

    return y2d.reshape(orig_shape)


if __name__ == "__main__":
    key = jax.random.PRNGKey(0)
    kx1, kx2, kx3, ka, kb, kc = jax.random.split(key, 6)

    # Deterministic "randn"-style parameters, matching nn.Parameter(torch.randn(1)) shapes.
    a = jax.random.normal(ka, (1,), dtype=jnp.float32)
    b = jax.random.normal(kb, (1,), dtype=jnp.float32)
    c = jax.random.normal(kc, (1,), dtype=jnp.float32)
    params = jnp.concatenate([a, b, c]).astype(jnp.float32)  # f32[3]

    def ref(x):
        xf = x.astype(jnp.float32)
        return (params[0] * xf ** 2 + params[1] * xf + params[2]).astype(x.dtype)

    # 1) Lane-dense Pallas path (total divisible by 1024): free reshape, ~8 grid steps.
    x1 = jax.random.normal(kx1, (1024, 1024), dtype=jnp.float32)
    y1 = jax.block_until_ready(quadratic_regression(x1, params))
    assert y1.shape == x1.shape and y1.dtype == x1.dtype
    assert jnp.allclose(y1, ref(x1), atol=1e-5, rtol=1e-5)

    # 2) Ragged shape whose total is NOT a multiple of 128: copy-free path where the
    #    block's last dim equals the full (odd) array dim; partial edge row-block.
    x2 = jax.random.normal(kx2, (4099, 257), dtype=jnp.float32)
    y2 = jax.block_until_ready(quadratic_regression(x2, params))
    assert y2.shape == x2.shape and y2.dtype == x2.dtype
    assert jnp.allclose(y2, ref(x2), atol=1e-5, rtol=1e-5)

    # 3) Tiny input -> fused XLA fallback (launch-overhead regime), same dtype/semantics.
    x3 = jax.random.normal(kx3, (8, 100), dtype=jnp.float32)
    y3 = jax.block_until_ready(quadratic_regression(x3, params))
    assert y3.shape == x3.shape and y3.dtype == x3.dtype
    assert jnp.allclose(y3, ref(x3), atol=1e-5, rtol=1e-5)

    # 4) bf16 input through the Pallas path: f32 math in-kernel, bf16 store.
    x4 = jax.random.normal(kx1, (2048, 1024), dtype=jnp.float32).astype(jnp.bfloat16)
    y4 = jax.block_until_ready(quadratic_regression(x4, params))
    assert y4.shape == x4.shape and y4.dtype == jnp.bfloat16
    assert jnp.allclose(y4.astype(jnp.float32), ref(x4).astype(jnp.float32),
                        atol=3e-2, rtol=3e-2)

    print("KERNEL_OK")
</pallas_src>

<mosaic_0001>
module attributes {stable_mosaic.version = 11 : i64} {
  func.func @quad_kernel(%arg0: i32, %arg1: memref<3xf32, #tpu.memory_space<smem>>, %arg2: memref<128x1024xf32, #tpu.memory_space<vmem>>, %arg3: memref<128x1024xf32, #tpu.memory_space<vmem>>) attributes {dimension_semantics = [#tpu.dimension_semantics<parallel>], iteration_bounds = array<i64: 8>, scalar_prefetch = 0 : i64, scratch_operands = 0 : i64, tpu.core_type = #tpu.core_type<tc>, window_params = [{transform_indices = @transform_0, window_bounds = array<i64: 3>}, {transform_indices = @transform_1, window_bounds = array<i64: 128, 1024>}, {transform_indices = @transform_2, window_bounds = array<i64: 128, 1024>}]} {
    %c0 = arith.constant 0 : index
    %0 = memref.load %arg1[%c0] : memref<3xf32, #tpu.memory_space<smem>>
    %c1 = arith.constant 1 : index
    %1 = memref.load %arg1[%c1] : memref<3xf32, #tpu.memory_space<smem>>
    %c2 = arith.constant 2 : index
    %2 = memref.load %arg1[%c2] : memref<3xf32, #tpu.memory_space<smem>>
    %c0_0 = arith.constant 0 : index
    %c0_1 = arith.constant 0 : index
    %3 = vector.load %arg2[%c0_0, %c0_1] : memref<128x1024xf32, #tpu.memory_space<vmem>>, vector<128x1024xf32>
    %4 = vector.broadcast %0 : f32 to vector<128x1024xf32>
    %5 = arith.mulf %4, %3 : vector<128x1024xf32>
    %6 = vector.broadcast %1 : f32 to vector<128x1024xf32>
    %7 = arith.addf %5, %6 : vector<128x1024xf32>
    %8 = arith.mulf %7, %3 : vector<128x1024xf32>
    %9 = vector.broadcast %2 : f32 to vector<128x1024xf32>
    %10 = arith.addf %8, %9 : vector<128x1024xf32>
    %c0_2 = arith.constant 0 : index
    %c0_3 = arith.constant 0 : index
    %11 = vector.load %arg3[%c0_2, %c0_3] : memref<128x1024xf32, #tpu.memory_space<vmem>>, vector<128x1024xf32>
    tpu.vector_store %arg3[%c0_2, %c0_3], %10 {strides = array<i32>} : memref<128x1024xf32, #tpu.memory_space<vmem>>, vector<128x1024xf32>,
    return
  }
  func.func @transform_0(%arg0: i32) -> i32 {
    %c0_i32 = arith.constant 0 : i32
    %c0_i32_0 = arith.constant 0 : i32
    return %c0_i32 : i32
  }
  func.func @transform_1(%arg0: i32) -> (i32, i32) {
    %c0_i32 = arith.constant 0 : i32
    %c0_i32_0 = arith.constant 0 : i32
    return %arg0, %c0_i32 : i32, i32
  }
  func.func @transform_2(%arg0: i32) -> (i32, i32) {
    %c0_i32 = arith.constant 0 : i32
    %c0_i32_0 = arith.constant 0 : i32
    return %arg0, %c0_i32 : i32, i32
  }
}

</mosaic_0001>

<bundles_post_ra>
// kernel: tpu_custom_call.1
= control target key start
LH: loop header
LB: loop body
LE: loop exit
PB: predicated region body
PF: predicated region fallthrough
CT: control target
= control target key end

     0   :  { %7 = vsyncpa [#allocation5], 0  ;;  %s2116_s0 = inlined_call_operand.hbm [shape: f32[3], index: 0, kind: input, shape index: {}]   ;;  %s2117_s1 = inlined_call_operand.hbm [shape: f32[1024,1024], index: 1, kind: input, shape index: {}]   ;;  %s2118_s2 = inlined_call_operand.hbm [shape: f32[1024,1024], index: 2, kind: output, shape index: {}]  }
   0x1   :  { %8 = vsyncpa [#allocation3], 0 }
   0x2   :  { %10 = vsyncpa [#allocation3 + $0x1], 0 }
   0x3   :  { %11 = vsyncpa [#allocation4], 0 }
   0x4   :  { %13 = vsyncpa [#allocation4 + $0x1], 0  ;;  %s1273_s9 = smov 0   ;;  %s1275_s10 = smov 0  }
   0x5   :  { %s1277_s11 = smov 0   ;;  %s1279_s12 = smov 0  }
   0x6 LB: > { %s1294_s13 = sadd.s32 4294967295, %s1249_s12   ;;  %s1051_s14 = sadd.s32 4294967294, %s1249_s12   ;;  %s1249_s12 = sphi %s1279_s12, %s2136_s12   ;;  %s1245_s11 = sphi %s1277_s11, %s2135_s11   ;;  %s1241_s10 = sphi %s1275_s10, %s2134_s10   ;;  %s1237_s9 = sphi %s1273_s9, %s2133_s9  }
   0x7   : > { %s1298_s15 = sadd.s32 1, %s1249_s12   ;;  %s47_s16 = sadd.s32 1, %s1245_s11 }
   0x8   : > { %s44_s17 = ssub.s32 %s1249_s12, %s1298_s15  ;;  %p54_p0 = scmp.ne.s32.totalorder %s1245_s11, %s1241_s10 }
   0x9   : > { %p45_p1 = scmp.eq.s32.totalorder %s44_s17, 0  ;;  %p55_p2 = scmp.eq.s32.totalorder %s1249_s12, 0 }
   0xa   : > { %p60_p3 = scmp.ne.s32.totalorder %s1241_s10, %s1237_s9  ;;  %p2120_p4 = scmp.eq.s32.totalorder %s1294_s13, 0 }
   0xb   : > { %s1310_s18 = scalar_select %p45_p1, %s1245_s11, %s47_s16  }
   0xc   : > { %p1312_p5 = por %p55_p2, %p54_p0  ;;  %p1318_p6 = por %p2120_p4, %p60_p3 }
   0xd   : > { %p84_p7 = scmp.eq.s32.totalorder %s1294_s13, 7  ;;  %p90_p8 = scmp.eq.s32.totalorder %s1051_s14, 7 }
   0xe   : > { %s2123_s20 = scalar_select %p1318_p6, 1, 0 }
   0xf   : > { %p1052_p9 = scmp.ge.s32.totalorder %s1249_s12, 1  ;;  %p97_p10 = scmp.lt.s32.totalorder %s1249_s12, 9 }
  0x10   : > { %p1325_p11 = por %p84_p7, %p54_p0  ;;  %p1329_p12 = por %p90_p8, %p60_p3 }
  0x11   : > { %p1333_p13 = pnand %p1052_p9, %p97_p10  ;;  %p1096_p2 = scmp.lt.s32.totalorder %s1249_s12, 8 }
  0x12   : > { %s2124_s21 = scalar_select %p1325_p11, 1, 0 }
  0x13   : > { %s2125_s22 = scalar_select %p1329_p12, 1, 0 }
  0x14   : > { %p1083_p1 = pneg %p1333_p13  ;;  %s119_s24 = sand.u32 1, %s1245_s11  }
  0x15   : > { %s1072_s25 = sshll.u32 %s1249_s12, 14  ;;  %p1346_p0 = pnand %p1096_p2, %p1312_p5 }
  0x16   : > { %p1084_p6 = pnand %p1083_p1, %p2120_p4  ;;  %s1055_s27 = sshll.u32 %s119_s24, 10 }
  0x17   : > { %s1136_s30 = scalar_lea.hbm %s2116_s0, 16 }
  0x18   : > { %p1137_p3 = scmp.ne.s32.totalorder %s2116_s0, %s1136_s30  ;;  %p1138_p7 = pneg %p1084_p6 }
  0x19   : > { %p1143_p10 = scmp.lt.u32.totalorder %s1136_s30, %s2116_s0 }
  0x1a   : > { %p1139_p8 = pnand %p1138_p7, %p1137_p3 }
  0x1c   : > { %p1140_p9 = pneg %p1139_p8 }
  0x1e   : > { %p1145_p5 = pnand %p1143_p10, %p1140_p9 }
  0x20   : > { %1148 = shalt.err (!%p1145_p5)
}
  0x21   : > { %s1251_s7 = smov [#allocation2]   ;;  %s1365_s19 = scalar_lea.hbm %s2117_s1, %s1072_s25 }
  0x22   : > { %1086 = dma.hbm_to_smem (!%p1084_p6), %s2116_s0, 16, %s1251_s7, [#allocation5]  }
  0x23   : > { %s123_s28 = scalar_lea.vmem [#allocation6], %s1055_s27  ;;  %s1369_s30 = scalar_lea.sflag [#allocation3], %s119_s24 }
  0x24   : > { %s131_s29 = sshll.u32 %s123_s28, 4  ;;  %s1149_s3 = scalar_lea.hbm %s1365_s19, 16384  ;;  %s1367_s29 = int_to_ptr.vmem [resolvable:$true] %s131_s29 }
  0x25   : > { %p1150_p1 = scmp.ne.s32.totalorder %s1365_s19, %s1149_s3  ;;  %p1151_p2 = pneg %p1346_p0 }
  0x26   : > { %s1154_s5 = scalar_lea.hbm %s2117_s1, 131072  ;;  %p1155_p7 = scmp.lt.u32.totalorder %s1365_s19, %s2117_s1 }
  0x27   : > { %p1152_p6 = pnand %p1151_p2, %p1150_p1  ;;  %p1156_p8 = scmp.lt.u32.totalorder %s1154_s5, %s1149_s3 }
  0x28   : > { %p1158_p10 = scmp.lt.u32.totalorder %s1149_s3, %s1365_s19 }
  0x29   : > { %p1153_p3 = pneg %p1152_p6  ;;  %p1157_p9 = por %p1156_p8, %p1155_p7 }
  0x2b   : > { %p1159_p5 = por %p1158_p10, %p1157_p9 }
  0x2d   : > { %p1160_p4 = pnand %p1159_p5, %p1153_p3 }
  0x2f   : > { %1163 = shalt.err (!%p1160_p4)
}
  0x30   : > { %s1164_s24 = scalar_lea.vmem %s1367_s29, 16384  ;;  %s1252_s27 = smov [#allocation6]  }
  0x31   : > { %p1165_p1 = scmp.ne.s32.totalorder %s1367_s29, %s1164_s24  ;;  %s1169_s8 = sshll.u32 %s1252_s27, 4  ;;  %s1170_s8 = int_to_ptr.vmem [resolvable:$false] %s1169_s8 }
  0x32   : > { %s1171_s14 = scalar_lea.vmem %s1170_s8, 32768  ;;  %p1172_p11 = scmp.lt.s32.totalorder %s1367_s29, %s1170_s8 }
  0x33   : > { %p1167_p6 = pnand %p1165_p1, %p1151_p2  ;;  %p1173_p7 = scmp.lt.s32.totalorder %s1171_s14, %s1164_s24 }
  0x35   : > { %p1168_p12 = pneg %p1167_p6  ;;  %p1174_p8 = por %p1173_p7, %p1172_p11 }
  0x37   : > { %p1175_p9 = pnand %p1174_p8, %p1168_p12 }
  0x39   : > { %1178 = shalt.err (!%p1175_p9)
}
  0x3a   : > { %s1253_s16 = smov 1024   ;;  %s1254_s17 = smov 64  }
  0x3b   : > { %1090 = dma.hbm_to_vmem [thread:$0]  (!%p1346_p0), %s1365_s19, 16384, %s1367_s29, %s1369_s30, %s1253_s16, %s1253_s16, %s1254_s17  }
  0x3c   : > { %143 = sbr.rel (%p1333_p13) target bundleno = 241 (0xf1), region = 28  ;;  %p2128_p4 = scmp.eq.s32.totalorder (!%p1333_p13), %s1294_s13, 0 }
  0x43   : > { %1224 = dma.done.wait (%p2128_p4), [#allocation5], 16   ;;  %p2129_p2 = pmov %p2128_p4 }
  0x44   : > { %s1404_s28 = sand.u32 1, %s1241_s10   ;;  %p2130_p11 = scmp.ne.s32.totalorder %s2123_s20, 0 }
  0x45   : > { %1226 = vsyncadd (%p2129_p2), [#allocation5], 4294967280  ;;  %s1061_s3 = sshll.u32 %s1404_s28, 10  ;;  %s150_s25 = scalar_lea.sflag [#allocation3], %s1404_s28 }
  0x46   : > { %s1410_s26 = scalar_lea.vmem [#allocation6], %s1061_s3 }
  0x47   : > { %1228 = dma.done.wait (%p2130_p11), %s150_s25, 16384  }
  0x48   : > { %1230 = vsyncadd (%p2130_p11), %s150_s25, 4294950912 }
  0x49   : > { %158 = sfence }
  0x4a   : > { %s177_s23 = sld [smem:[#allocation2]]  ;;  %s1063_s19 = sld [smem:[#allocation2 + $0x1]]  ;;  %v180_v0 = vld [vmem:[%s1410_s26] sm:$0xff]  ;;  %v181_v1 = vld [vmem:[%s1410_s26 + $0x8] sm:$0xff]  ;;  %v182_v2 = vld [vmem:[%s1410_s26 + $0x10] sm:$0xff] }
  0x4b   : > { %s1064_s29 = sld [smem:[#allocation2 + $0x2]]  ;;  %v183_v3 = vld [vmem:[%s1410_s26 + $0x18] sm:$0xff]  ;;  %v184_v4 = vld [vmem:[%s1410_s26 + $0x20] sm:$0xff]  ;;  %v185_v5 = vld [vmem:[%s1410_s26 + $0x28] sm:$0xff]  ;;  %s1462_s20 = scalar_lea.vmem [#allocation7], %s1061_s3 }
  0x4c   : > { %v186_v7 = vld [vmem:[%s1410_s26 + $0x30] sm:$0xff]  ;;  %v187_v8 = vld [vmem:[%s1410_s26 + $0x38] sm:$0xff]  ;;  %v188_v33 = vld [vmem:[%s1410_s26 + $0x40] sm:$0xff]  ;;  %s1074_s30 = sshll.u32 %s1294_s13, 14  ;;  %s966_s4 = sshll.u32 %s1462_s20, 4  ;;  %s2063_s4 = int_to_ptr.vmem [resolvable:$true] %s966_s4 }
  0x4d   : > { %v189_v34 = vld [vmem:[%s1410_s26 + $0x48] sm:$0xff]  ;;  %v190_v35 = vld [vmem:[%s1410_s26 + $0x50] sm:$0xff]  ;;  %v191_v40 = vld [vmem:[%s1410_s26 + $0x58] sm:$0xff]  ;;  %s2061_s6 = scalar_lea.hbm %s2118_s2, %s1074_s30  ;;  %s952_s7 = scalar_lea.sflag [#allocation4], %s1404_s28 }
  0x4e   : > { %v192_v41 = vld [vmem:[%s1410_s26 + $0x60] sm:$0xff]  ;;  %v193_v42 = vld [vmem:[%s1410_s26 + $0x68] sm:$0xff]  ;;  %v194_v47 = vld [vmem:[%s1410_s26 + $0x70] sm:$0xff]  ;;  %s1179_s24 = scalar_lea.vmem %s2063_s4, 16384  ;;  %p2131_p13 = scmp.ne.s32.totalorder %s2124_s21, 0 }
  0x4f   : > { %v195_v48 = vld [vmem:[%s1410_s26 + $0x78] sm:$0xff]  ;;  %p1180_p12 = scmp.ne.s32.totalorder %s2063_s4, %s1179_s24  ;;  %s1255_s27 = smov [#allocation7]  }
  0x50   : > { %v1422_v6 = vstv %s177_s23  ;;  %v1427_v10 = vstv %s1063_s19  ;;  %s1183_s8 = sshll.u32 %s1255_s27, 4  ;;  %s1184_s8 = int_to_ptr.vmem [resolvable:$false] %s1183_s8 }
  0x51   : > { %v309_v9 = vmul.f32 %v1422_v6, %v180_v0  ;;  %v1429_v11 = vstv %s1064_s29  ;;  %v310_v12 = vmul.f32 %v1422_v6, %v181_v1  ;;  %v311_v13 = vmul.f32 %v1422_v6, %v182_v2  ;;  %p1181_p0 = pnand %p1180_p12, %p2131_p13  ;;  %s1185_s14 = scalar_lea.vmem %s1184_s8, 32768 }
  0x52   : > { %v312_v14 = vmul.f32 %v1422_v6, %v183_v3  ;;  %v313_v15 = vmul.f32 %v1422_v6, %v184_v4  ;;  %v314_v16 = vmul.f32 %v1422_v6, %v185_v5  ;;  %v315_v19 = vmul.f32 %v1422_v6, %v186_v7  ;;  %p1186_p10 = scmp.lt.s32.totalorder %s2063_s4, %s1184_s8  ;;  %p1187_p5 = scmp.lt.s32.totalorder %s1185_s14, %s1179_s24 }
  0x53   : > { %v438_v17 = vadd.f32 %v1427_v10, %v309_v9  ;;  %v439_v18 = vadd.f32 %v1427_v10, %v310_v12  ;;  %v316_v20 = vmul.f32 %v1422_v6, %v187_v8  ;;  %v440_v21 = vadd.f32 %v1427_v10, %v311_v13  ;;  %v196_v12 = vld [vmem:[%s1410_s26 + $0x80] sm:$0xff]  ;;  %v197_v13 = vld [vmem:[%s1410_s26 + $0x88] sm:$0xff]  ;;  %p1182_p3 = pneg %p1181_p0 }
  0x54   : > { %v441_v22 = vadd.f32 %v1427_v10, %v312_v14  ;;  %v442_v23 = vadd.f32 %v1427_v10, %v313_v15  ;;  %v443_v24 = vadd.f32 %v1427_v10, %v314_v16  ;;  %v444_v27 = vadd.f32 %v1427_v10, %v315_v19  ;;  %v198_v14 = vld [vmem:[%s1410_s26 + $0x90] sm:$0xff]  ;;  %v199_v19 = vld [vmem:[%s1410_s26 + $0x98] sm:$0xff]  ;;  %p1188_p1 = por %p1187_p5, %p1186_p10 }
  0x55   : > { %v566_v25 = vmul.f32 %v438_v17, %v180_v0  ;;  %v567_v26 = vmul.f32 %v439_v18, %v181_v1  ;;  %v445_v28 = vadd.f32 %v1427_v10, %v316_v20  ;;  %v568_v29 = vmul.f32 %v440_v21, %v182_v2  ;;  %v200_v20 = vld [vmem:[%s1410_s26 + $0xa0] sm:$0xff]  ;;  %v201_v21 = vld [vmem:[%s1410_s26 + $0xa8] sm:$0xff] }
  0x56   : > { %v569_v30 = vmul.f32 %v441_v22, %v183_v3  ;;  %v570_v31 = vmul.f32 %v442_v23, %v184_v4  ;;  %v571_v32 = vmul.f32 %v443_v24, %v185_v5  ;;  %v572_v38 = vmul.f32 %v444_v27, %v186_v7  ;;  %v203_v27 = vld [vmem:[%s1410_s26 + $0xb8] sm:$0xff]  ;;  %p1189_p6 = pnand %p1188_p1, %p1182_p3 }
  0x57   : > { %v695_v36 = vadd.f32 %v1429_v11, %v566_v25  ;;  %v696_v37 = vadd.f32 %v1429_v11, %v567_v26  ;;  %v573_v39 = vmul.f32 %v445_v28, %v187_v8  ;;  %v697_v43 = vadd.f32 %v1429_v11, %v568_v29  ;;  %v202_v26 = vld [vmem:[%s1410_s26 + $0xb0] sm:$0xff] }
  0x58   : > { %v698_v44 = vadd.f32 %v1429_v11, %v569_v30  ;;  %v699_v45 = vadd.f32 %v1429_v11, %v570_v31  ;;  %v700_v46 = vadd.f32 %v1429_v11, %v571_v32  ;;  %v701_v49 = vadd.f32 %v1429_v11, %v572_v38 }
  0x59   : > { %823 = vst [vmem:[%s1462_s20] sm:$0xff] %v695_v36  ;;  %824 = vst [vmem:[%s1462_s20 + $0x8] sm:$0xff] %v696_v37  ;;  %v702_v50 = vadd.f32 %v1429_v11, %v573_v39  ;;  %v317_v51 = vmul.f32 %v1422_v6, %v188_v33  ;;  %v318_v52 = vmul.f32 %v1422_v6, %v189_v34 }
  0x5a   : > { %825 = vst [vmem:[%s1462_s20 + $0x10] sm:$0xff] %v697_v43  ;;  %826 = vst [vmem:[%s1462_s20 + $0x18] sm:$0xff] %v698_v44  ;;  %v319_v53 = vmul.f32 %v1422_v6, %v190_v35  ;;  %v320_v54 = vmul.f32 %v1422_v6, %v191_v40  ;;  %v321_v55 = vmul.f32 %v1422_v6, %v192_v41 }
  0x5b   : > { %827 = vst [vmem:[%s1462_s20 + $0x20] sm:$0xff] %v699_v45  ;;  %828 = vst [vmem:[%s1462_s20 + $0x28] sm:$0xff] %v700_v46  ;;  %v322_v56 = vmul.f32 %v1422_v6, %v193_v42  ;;  %v446_v57 = vadd.f32 %v1427_v10, %v317_v51  ;;  %v447_v58 = vadd.f32 %v1427_v10, %v318_v52  ;;  %v204_v52 = vld [vmem:[%s1410_s26 + $0xc0] sm:$0xff] }
  0x5c   : > { %829 = vst [vmem:[%s1462_s20 + $0x30] sm:$0xff] %v701_v49  ;;  %830 = vst [vmem:[%s1462_s20 + $0x38] sm:$0xff] %v702_v50  ;;  %v323_v59 = vmul.f32 %v1422_v6, %v194_v47  ;;  %v324_v60 = vmul.f32 %v1422_v6, %v195_v48  ;;  %v448_v61 = vadd.f32 %v1427_v10, %v319_v53  ;;  %v205_v53 = vld [vmem:[%s1410_s26 + $0xc8] sm:$0xff] }
  0x5d   : > { %v449_v62 = vadd.f32 %v1427_v10, %v320_v54  ;;  %v450_v63 = vadd.f32 %v1427_v10, %v321_v55  ;;  %v451_v0 = vadd.f32 %v1427_v10, %v322_v56  ;;  %v574_v1 = vmul.f32 %v446_v57, %v188_v33  ;;  %v206_v54 = vld [vmem:[%s1410_s26 + $0xd0] sm:$0xff] }
  0x5e   : > { %v575_v2 = vmul.f32 %v447_v58, %v189_v34  ;;  %v452_v3 = vadd.f32 %v1427_v10, %v323_v59  ;;  %v453_v4 = vadd.f32 %v1427_v10, %v324_v60  ;;  %v576_v5 = vmul.f32 %v448_v61, %v190_v35  ;;  %v207_v59 = vld [vmem:[%s1410_s26 + $0xd8] sm:$0xff]  ;;  %v208_v60 = vld [vmem:[%s1410_s26 + $0xe0] sm:$0xff]  ;;  %v209_v61 = vld [vmem:[%s1410_s26 + $0xe8] sm:$0xff] }
  0x5f   : > { %v577_v7 = vmul.f32 %v449_v62, %v191_v40  ;;  %v578_v8 = vmul.f32 %v450_v63, %v192_v41  ;;  %v579_v9 = vmul.f32 %v451_v0, %v193_v42  ;;  %v703_v15 = vadd.f32 %v1429_v11, %v574_v1 }
  0x60   : > { %v704_v16 = vadd.f32 %v1429_v11, %v575_v2  ;;  %v580_v17 = vmul.f32 %v452_v3, %v194_v47  ;;  %v581_v18 = vmul.f32 %v453_v4, %v195_v48  ;;  %v705_v22 = vadd.f32 %v1429_v11, %v576_v5  ;;  %v210_v2 = vld [vmem:[%s1410_s26 + $0xf0] sm:$0xff]  ;;  %v211_v3 = vld [vmem:[%s1410_s26 + $0xf8] sm:$0xff] }
  0x61   : > { %v706_v23 = vadd.f32 %v1429_v11, %v577_v7  ;;  %v707_v24 = vadd.f32 %v1429_v11, %v578_v8  ;;  %v708_v25 = vadd.f32 %v1429_v11, %v579_v9  ;;  %831 = vst [vmem:[%s1462_s20 + $0x40] sm:$0xff] %v703_v15  ;;  %v325_v30 = vmul.f32 %v1422_v6, %v196_v12 }
  0x62   : > { %832 = vst [vmem:[%s1462_s20 + $0x48] sm:$0xff] %v704_v16  ;;  %v709_v28 = vadd.f32 %v1429_v11, %v580_v17  ;;  %v710_v29 = vadd.f32 %v1429_v11, %v581_v18  ;;  %v326_v31 = vmul.f32 %v1422_v6, %v197_v13  ;;  %833 = vst [vmem:[%s1462_s20 + $0x50] sm:$0xff] %v705_v22 }
  0x63   : > { %834 = vst [vmem:[%s1462_s20 + $0x58] sm:$0xff] %v706_v23  ;;  %835 = vst [vmem:[%s1462_s20 + $0x60] sm:$0xff] %v707_v24  ;;  %v327_v32 = vmul.f32 %v1422_v6, %v198_v14  ;;  %v328_v33 = vmul.f32 %v1422_v6, %v199_v19  ;;  %v329_v34 = vmul.f32 %v1422_v6, %v200_v20 }
  0x64   : > { %836 = vst [vmem:[%s1462_s20 + $0x68] sm:$0xff] %v708_v25  ;;  %v330_v35 = vmul.f32 %v1422_v6, %v201_v21  ;;  %837 = vst [vmem:[%s1462_s20 + $0x70] sm:$0xff] %v709_v28  ;;  %v454_v36 = vadd.f32 %v1427_v10, %v325_v30  ;;  %v455_v37 = vadd.f32 %v1427_v10, %v326_v31  ;;  %v212_v31 = vld [vmem:[%s1410_s26 + $0x100] sm:$0xff] }
  0x65   : > { %838 = vst [vmem:[%s1462_s20 + $0x78] sm:$0xff] %v710_v29  ;;  %v331_v38 = vmul.f32 %v1422_v6, %v202_v26  ;;  %v332_v39 = vmul.f32 %v1422_v6, %v203_v27  ;;  %v456_v40 = vadd.f32 %v1427_v10, %v327_v32  ;;  %v457_v41 = vadd.f32 %v1427_v10, %v328_v33  ;;  %v213_v32 = vld [vmem:[%s1410_s26 + $0x108] sm:$0xff]  ;;  %v214_v33 = vld [vmem:[%s1410_s26 + $0x110] sm:$0xff] }
  0x66   : > { %v458_v42 = vadd.f32 %v1427_v10, %v329_v34  ;;  %v459_v43 = vadd.f32 %v1427_v10, %v330_v35  ;;  %v582_v44 = vmul.f32 %v454_v36, %v196_v12  ;;  %v583_v45 = vmul.f32 %v455_v37, %v197_v13 }
  0x67   : > { %v460_v46 = vadd.f32 %v1427_v10, %v331_v38  ;;  %v461_v47 = vadd.f32 %v1427_v10, %v332_v39  ;;  %v584_v48 = vmul.f32 %v456_v40, %v198_v14  ;;  %v585_v49 = vmul.f32 %v457_v41, %v199_v19  ;;  %v215_v38 = vld [vmem:[%s1410_s26 + $0x118] sm:$0xff]  ;;  %v216_v39 = vld [vmem:[%s1410_s26 + $0x120] sm:$0xff]  ;;  %v217_v40 = vld [vmem:[%s1410_s26 + $0x128] sm:$0xff] }
  0x68   : > { %v586_v50 = vmul.f32 %v458_v42, %v200_v20  ;;  %v587_v51 = vmul.f32 %v459_v43, %v201_v21  ;;  %v711_v55 = vadd.f32 %v1429_v11, %v582_v44  ;;  %v712_v56 = vadd.f32 %v1429_v11, %v583_v45  ;;  %v218_v45 = vld [vmem:[%s1410_s26 + $0x130] sm:$0xff] }
  0x69   : > { %v588_v57 = vmul.f32 %v460_v46, %v202_v26  ;;  %v589_v58 = vmul.f32 %v461_v47, %v203_v27  ;;  %v713_v62 = vadd.f32 %v1429_v11, %v584_v48  ;;  %v714_v63 = vadd.f32 %v1429_v11, %v585_v49  ;;  %v219_v46 = vld [vmem:[%s1410_s26 + $0x138] sm:$0xff] }
  0x6a   : > { %v715_v0 = vadd.f32 %v1429_v11, %v586_v50  ;;  %v716_v1 = vadd.f32 %v1429_v11, %v587_v51  ;;  %839 = vst [vmem:[%s1462_s20 + $0x80] sm:$0xff] %v711_v55  ;;  %840 = vst [vmem:[%s1462_s20 + $0x88] sm:$0xff] %v712_v56  ;;  %v333_v7 = vmul.f32 %v1422_v6, %v204_v52 }
  0x6b   : > { %v717_v4 = vadd.f32 %v1429_v11, %v588_v57  ;;  %v718_v5 = vadd.f32 %v1429_v11, %v589_v58  ;;  %v334_v8 = vmul.f32 %v1422_v6, %v205_v53  ;;  %841 = vst [vmem:[%s1462_s20 + $0x90] sm:$0xff] %v713_v62  ;;  %842 = vst [vmem:[%s1462_s20 + $0x98] sm:$0xff] %v714_v63 }
  0x6c   : > { %843 = vst [vmem:[%s1462_s20 + $0xa0] sm:$0xff] %v715_v0  ;;  %844 = vst [vmem:[%s1462_s20 + $0xa8] sm:$0xff] %v716_v1  ;;  %v335_v9 = vmul.f32 %v1422_v6, %v206_v54  ;;  %v336_v12 = vmul.f32 %v1422_v6, %v207_v59  ;;  %v337_v13 = vmul.f32 %v1422_v6, %v208_v60 }
  0x6d   : > { %v338_v14 = vmul.f32 %v1422_v6, %v209_v61  ;;  %845 = vst [vmem:[%s1462_s20 + $0xb0] sm:$0xff] %v717_v4  ;;  %846 = vst [vmem:[%s1462_s20 + $0xb8] sm:$0xff] %v718_v5  ;;  %v462_v15 = vadd.f32 %v1427_v10, %v333_v7  ;;  %v463_v16 = vadd.f32 %v1427_v10, %v334_v8  ;;  %v220_v8 = vld [vmem:[%s1410_s26 + $0x140] sm:$0xff] }
  0x6e   : > { %v339_v17 = vmul.f32 %v1422_v6, %v210_v2  ;;  %v340_v18 = vmul.f32 %v1422_v6, %v211_v3  ;;  %v464_v19 = vadd.f32 %v1427_v10, %v335_v9  ;;  %v465_v20 = vadd.f32 %v1427_v10, %v336_v12  ;;  %v221_v9 = vld [vmem:[%s1410_s26 + $0x148] sm:$0xff]  ;;  %v222_v12 = vld [vmem:[%s1410_s26 + $0x150] sm:$0xff] }
  0x6f   : > { %v466_v21 = vadd.f32 %v1427_v10, %v337_v13  ;;  %v467_v22 = vadd.f32 %v1427_v10, %v338_v14  ;;  %v590_v23 = vmul.f32 %v462_v15, %v204_v52  ;;  %v591_v24 = vmul.f32 %v463_v16, %v205_v53 }
  0x70   : > { %v468_v25 = vadd.f32 %v1427_v10, %v339_v17  ;;  %v469_v26 = vadd.f32 %v1427_v10, %v340_v18  ;;  %v592_v27 = vmul.f32 %v464_v19, %v206_v54  ;;  %v593_v28 = vmul.f32 %v465_v20, %v207_v59  ;;  %v223_v17 = vld [vmem:[%s1410_s26 + $0x158] sm:$0xff]  ;;  %v224_v18 = vld [vmem:[%s1410_s26 + $0x160] sm:$0xff]  ;;  %v225_v19 = vld [vmem:[%s1410_s26 + $0x168] sm:$0xff] }
  0x71   : > { %v594_v29 = vmul.f32 %v466_v21, %v208_v60  ;;  %v595_v30 = vmul.f32 %v467_v22, %v209_v61  ;;  %v719_v34 = vadd.f32 %v1429_v11, %v590_v23  ;;  %v720_v35 = vadd.f32 %v1429_v11, %v591_v24  ;;  %v226_v24 = vld [vmem:[%s1410_s26 + $0x170] sm:$0xff] }
  0x72   : > { %v596_v36 = vmul.f32 %v468_v25, %v210_v2  ;;  %v597_v37 = vmul.f32 %v469_v26, %v211_v3  ;;  %v721_v41 = vadd.f32 %v1429_v11, %v592_v27  ;;  %v722_v42 = vadd.f32 %v1429_v11, %v593_v28  ;;  %v227_v25 = vld [vmem:[%s1410_s26 + $0x178] sm:$0xff] }
  0x73   : > { %v723_v43 = vadd.f32 %v1429_v11, %v594_v29  ;;  %v724_v44 = vadd.f32 %v1429_v11, %v595_v30  ;;  %847 = vst [vmem:[%s1462_s20 + $0xc0] sm:$0xff] %v719_v34  ;;  %848 = vst [vmem:[%s1462_s20 + $0xc8] sm:$0xff] %v720_v35  ;;  %v341_v49 = vmul.f32 %v1422_v6, %v212_v31 }
  0x74   : > { %v725_v47 = vadd.f32 %v1429_v11, %v596_v36  ;;  %v726_v48 = vadd.f32 %v1429_v11, %v597_v37  ;;  %v342_v50 = vmul.f32 %v1422_v6, %v213_v32  ;;  %849 = vst [vmem:[%s1462_s20 + $0xd0] sm:$0xff] %v721_v41  ;;  %850 = vst [vmem:[%s1462_s20 + $0xd8] sm:$0xff] %v722_v42 }
  0x75   : > { %851 = vst [vmem:[%s1462_s20 + $0xe0] sm:$0xff] %v723_v43  ;;  %852 = vst [vmem:[%s1462_s20 + $0xe8] sm:$0xff] %v724_v44  ;;  %v343_v51 = vmul.f32 %v1422_v6, %v214_v33  ;;  %v344_v52 = vmul.f32 %v1422_v6, %v215_v38  ;;  %v345_v53 = vmul.f32 %v1422_v6, %v216_v39 }
  0x76   : > { %v346_v54 = vmul.f32 %v1422_v6, %v217_v40  ;;  %853 = vst [vmem:[%s1462_s20 + $0xf0] sm:$0xff] %v725_v47  ;;  %854 = vst [vmem:[%s1462_s20 + $0xf8] sm:$0xff] %v726_v48  ;;  %v470_v55 = vadd.f32 %v1427_v10, %v341_v49  ;;  %v471_v56 = vadd.f32 %v1427_v10, %v342_v50  ;;  %v228_v50 = vld [vmem:[%s1410_s26 + $0x180] sm:$0xff] }
  0x77   : > { %v347_v57 = vmul.f32 %v1422_v6, %v218_v45  ;;  %v348_v58 = vmul.f32 %v1422_v6, %v219_v46  ;;  %v472_v59 = vadd.f32 %v1427_v10, %v343_v51  ;;  %v473_v60 = vadd.f32 %v1427_v10, %v344_v52  ;;  %v229_v51 = vld [vmem:[%s1410_s26 + $0x188] sm:$0xff]  ;;  %v230_v52 = vld [vmem:[%s1410_s26 + $0x190] sm:$0xff] }
  0x78   : > { %v474_v61 = vadd.f32 %v1427_v10, %v345_v53  ;;  %v475_v62 = vadd.f32 %v1427_v10, %v346_v54  ;;  %v598_v63 = vmul.f32 %v470_v55, %v212_v31  ;;  %v599_v0 = vmul.f32 %v471_v56, %v213_v32 }
  0x79   : > { %v476_v1 = vadd.f32 %v1427_v10, %v347_v57  ;;  %v477_v2 = vadd.f32 %v1427_v10, %v348_v58  ;;  %v600_v3 = vmul.f32 %v472_v59, %v214_v33  ;;  %v601_v4 = vmul.f32 %v473_v60, %v215_v38  ;;  %v231_v57 = vld [vmem:[%s1410_s26 + $0x198] sm:$0xff]  ;;  %v232_v58 = vld [vmem:[%s1410_s26 + $0x1a0] sm:$0xff]  ;;  %v233_v59 = vld [vmem:[%s1410_s26 + $0x1a8] sm:$0xff] }
  0x7a   : > { %v602_v5 = vmul.f32 %v474_v61, %v216_v39  ;;  %v603_v7 = vmul.f32 %v475_v62, %v217_v40  ;;  %v727_v13 = vadd.f32 %v1429_v11, %v598_v63  ;;  %v728_v14 = vadd.f32 %v1429_v11, %v599_v0  ;;  %v234_v0 = vld [vmem:[%s1410_s26 + $0x1b0] sm:$0xff] }
  0x7b   : > { %v604_v15 = vmul.f32 %v476_v1, %v218_v45  ;;  %v605_v16 = vmul.f32 %v477_v2, %v219_v46  ;;  %v729_v20 = vadd.f32 %v1429_v11, %v600_v3  ;;  %v730_v21 = vadd.f32 %v1429_v11, %v601_v4  ;;  %v235_v1 = vld [vmem:[%s1410_s26 + $0x1b8] sm:$0xff] }
  0x7c   : > { %v731_v22 = vadd.f32 %v1429_v11, %v602_v5  ;;  %v732_v23 = vadd.f32 %v1429_v11, %v603_v7  ;;  %855 = vst [vmem:[%s1462_s20 + $0x100] sm:$0xff] %v727_v13  ;;  %856 = vst [vmem:[%s1462_s20 + $0x108] sm:$0xff] %v728_v14  ;;  %v349_v28 = vmul.f32 %v1422_v6, %v220_v8 }
  0x7d   : > { %v733_v26 = vadd.f32 %v1429_v11, %v604_v15  ;;  %v734_v27 = vadd.f32 %v1429_v11, %v605_v16  ;;  %v350_v29 = vmul.f32 %v1422_v6, %v221_v9  ;;  %857 = vst [vmem:[%s1462_s20 + $0x110] sm:$0xff] %v729_v20  ;;  %858 = vst [vmem:[%s1462_s20 + $0x118] sm:$0xff] %v730_v21 }
  0x7e   : > { %859 = vst [vmem:[%s1462_s20 + $0x120] sm:$0xff] %v731_v22  ;;  %860 = vst [vmem:[%s1462_s20 + $0x128] sm:$0xff] %v732_v23  ;;  %v351_v30 = vmul.f32 %v1422_v6, %v222_v12  ;;  %v352_v31 = vmul.f32 %v1422_v6, %v223_v17  ;;  %v353_v32 = vmul.f32 %v1422_v6, %v224_v18 }
  0x7f   : > { %v354_v33 = vmul.f32 %v1422_v6, %v225_v19  ;;  %861 = vst [vmem:[%s1462_s20 + $0x130] sm:$0xff] %v733_v26  ;;  %862 = vst [vmem:[%s1462_s20 + $0x138] sm:$0xff] %v734_v27  ;;  %v478_v34 = vadd.f32 %v1427_v10, %v349_v28  ;;  %v479_v35 = vadd.f32 %v1427_v10, %v350_v29  ;;  %v236_v29 = vld [vmem:[%s1410_s26 + $0x1c0] sm:$0xff] }
  0x80   : > { %v355_v36 = vmul.f32 %v1422_v6, %v226_v24  ;;  %v356_v37 = vmul.f32 %v1422_v6, %v227_v25  ;;  %v480_v38 = vadd.f32 %v1427_v10, %v351_v30  ;;  %v481_v39 = vadd.f32 %v1427_v10, %v352_v31  ;;  %v237_v30 = vld [vmem:[%s1410_s26 + $0x1c8] sm:$0xff]  ;;  %v238_v31 = vld [vmem:[%s1410_s26 + $0x1d0] sm:$0xff] }
  0x81   : > { %v482_v40 = vadd.f32 %v1427_v10, %v353_v32  ;;  %v483_v41 = vadd.f32 %v1427_v10, %v354_v33  ;;  %v606_v42 = vmul.f32 %v478_v34, %v220_v8  ;;  %v607_v43 = vmul.f32 %v479_v35, %v221_v9 }
  0x82   : > { %v484_v44 = vadd.f32 %v1427_v10, %v355_v36  ;;  %v485_v45 = vadd.f32 %v1427_v10, %v356_v37  ;;  %v608_v46 = vmul.f32 %v480_v38, %v222_v12  ;;  %v609_v47 = vmul.f32 %v481_v39, %v223_v17  ;;  %v239_v36 = vld [vmem:[%s1410_s26 + $0x1d8] sm:$0xff]  ;;  %v240_v37 = vld [vmem:[%s1410_s26 + $0x1e0] sm:$0xff]  ;;  %v241_v38 = vld [vmem:[%s1410_s26 + $0x1e8] sm:$0xff] }
  0x83   : > { %v610_v48 = vmul.f32 %v482_v40, %v224_v18  ;;  %v611_v49 = vmul.f32 %v483_v41, %v225_v19  ;;  %v735_v53 = vadd.f32 %v1429_v11, %v606_v42  ;;  %v736_v54 = vadd.f32 %v1429_v11, %v607_v43  ;;  %v242_v43 = vld [vmem:[%s1410_s26 + $0x1f0] sm:$0xff] }
  0x84   : > { %v612_v55 = vmul.f32 %v484_v44, %v226_v24  ;;  %v613_v56 = vmul.f32 %v485_v45, %v227_v25  ;;  %v737_v60 = vadd.f32 %v1429_v11, %v608_v46  ;;  %v738_v61 = vadd.f32 %v1429_v11, %v609_v47  ;;  %v243_v44 = vld [vmem:[%s1410_s26 + $0x1f8] sm:$0xff] }
  0x85   : > { %v739_v62 = vadd.f32 %v1429_v11, %v610_v48  ;;  %v740_v63 = vadd.f32 %v1429_v11, %v611_v49  ;;  %863 = vst [vmem:[%s1462_s20 + $0x140] sm:$0xff] %v735_v53  ;;  %864 = vst [vmem:[%s1462_s20 + $0x148] sm:$0xff] %v736_v54  ;;  %v357_v4 = vmul.f32 %v1422_v6, %v228_v50 }
  0x86   : > { %v741_v2 = vadd.f32 %v1429_v11, %v612_v55  ;;  %v742_v3 = vadd.f32 %v1429_v11, %v613_v56  ;;  %v358_v5 = vmul.f32 %v1422_v6, %v229_v51  ;;  %865 = vst [vmem:[%s1462_s20 + $0x150] sm:$0xff] %v737_v60  ;;  %866 = vst [vmem:[%s1462_s20 + $0x158] sm:$0xff] %v738_v61 }
  0x87   : > { %867 = vst [vmem:[%s1462_s20 + $0x160] sm:$0xff] %v739_v62  ;;  %868 = vst [vmem:[%s1462_s20 + $0x168] sm:$0xff] %v740_v63  ;;  %v359_v7 = vmul.f32 %v1422_v6, %v230_v52  ;;  %v360_v8 = vmul.f32 %v1422_v6, %v231_v57  ;;  %v361_v9 = vmul.f32 %v1422_v6, %v232_v58 }
  0x88   : > { %v362_v12 = vmul.f32 %v1422_v6, %v233_v59  ;;  %869 = vst [vmem:[%s1462_s20 + $0x170] sm:$0xff] %v741_v2  ;;  %870 = vst [vmem:[%s1462_s20 + $0x178] sm:$0xff] %v742_v3  ;;  %v486_v13 = vadd.f32 %v1427_v10, %v357_v4  ;;  %v487_v14 = vadd.f32 %v1427_v10, %v358_v5  ;;  %v244_v5 = vld [vmem:[%s1410_s26 + $0x200] sm:$0xff] }
  0x89   : > { %v363_v15 = vmul.f32 %v1422_v6, %v234_v0  ;;  %v364_v16 = vmul.f32 %v1422_v6, %v235_v1  ;;  %v488_v17 = vadd.f32 %v1427_v10, %v359_v7  ;;  %v489_v18 = vadd.f32 %v1427_v10, %v360_v8  ;;  %v245_v7 = vld [vmem:[%s1410_s26 + $0x208] sm:$0xff]  ;;  %v246_v8 = vld [vmem:[%s1410_s26 + $0x210] sm:$0xff] }
  0x8a   : > { %v490_v19 = vadd.f32 %v1427_v10, %v361_v9  ;;  %v491_v20 = vadd.f32 %v1427_v10, %v362_v12  ;;  %v614_v21 = vmul.f32 %v486_v13, %v228_v50  ;;  %v615_v22 = vmul.f32 %v487_v14, %v229_v51 }
  0x8b   : > { %v492_v23 = vadd.f32 %v1427_v10, %v363_v15  ;;  %v493_v24 = vadd.f32 %v1427_v10, %v364_v16  ;;  %v616_v25 = vmul.f32 %v488_v17, %v230_v52  ;;  %v617_v26 = vmul.f32 %v489_v18, %v231_v57  ;;  %v247_v15 = vld [vmem:[%s1410_s26 + $0x218] sm:$0xff]  ;;  %v248_v16 = vld [vmem:[%s1410_s26 + $0x220] sm:$0xff]  ;;  %v249_v17 = vld [vmem:[%s1410_s26 + $0x228] sm:$0xff] }
  0x8c   : > { %v618_v27 = vmul.f32 %v490_v19, %v232_v58  ;;  %v619_v28 = vmul.f32 %v491_v20, %v233_v59  ;;  %v743_v32 = vadd.f32 %v1429_v11, %v614_v21  ;;  %v744_v33 = vadd.f32 %v1429_v11, %v615_v22  ;;  %v250_v22 = vld [vmem:[%s1410_s26 + $0x230] sm:$0xff] }
  0x8d   : > { %v620_v34 = vmul.f32 %v492_v23, %v234_v0  ;;  %v621_v35 = vmul.f32 %v493_v24, %v235_v1  ;;  %v745_v39 = vadd.f32 %v1429_v11, %v616_v25  ;;  %v746_v40 = vadd.f32 %v1429_v11, %v617_v26  ;;  %v251_v23 = vld [vmem:[%s1410_s26 + $0x238] sm:$0xff] }
  0x8e   : > { %v747_v41 = vadd.f32 %v1429_v11, %v618_v27  ;;  %v748_v42 = vadd.f32 %v1429_v11, %v619_v28  ;;  %871 = vst [vmem:[%s1462_s20 + $0x180] sm:$0xff] %v743_v32  ;;  %872 = vst [vmem:[%s1462_s20 + $0x188] sm:$0xff] %v744_v33  ;;  %v365_v47 = vmul.f32 %v1422_v6, %v236_v29 }
  0x8f   : > { %v749_v45 = vadd.f32 %v1429_v11, %v620_v34  ;;  %v750_v46 = vadd.f32 %v1429_v11, %v621_v35  ;;  %v366_v48 = vmul.f32 %v1422_v6, %v237_v30  ;;  %873 = vst [vmem:[%s1462_s20 + $0x190] sm:$0xff] %v745_v39  ;;  %874 = vst [vmem:[%s1462_s20 + $0x198] sm:$0xff] %v746_v40 }
  0x90   : > { %875 = vst [vmem:[%s1462_s20 + $0x1a0] sm:$0xff] %v747_v41  ;;  %876 = vst [vmem:[%s1462_s20 + $0x1a8] sm:$0xff] %v748_v42  ;;  %v367_v49 = vmul.f32 %v1422_v6, %v238_v31  ;;  %v368_v50 = vmul.f32 %v1422_v6, %v239_v36  ;;  %v369_v51 = vmul.f32 %v1422_v6, %v240_v37 }
  0x91   : > { %v370_v52 = vmul.f32 %v1422_v6, %v241_v38  ;;  %877 = vst [vmem:[%s1462_s20 + $0x1b0] sm:$0xff] %v749_v45  ;;  %878 = vst [vmem:[%s1462_s20 + $0x1b8] sm:$0xff] %v750_v46  ;;  %v494_v53 = vadd.f32 %v1427_v10, %v365_v47  ;;  %v495_v54 = vadd.f32 %v1427_v10, %v366_v48  ;;  %v252_v48 = vld [vmem:[%s1410_s26 + $0x240] sm:$0xff] }
  0x92   : > { %v371_v55 = vmul.f32 %v1422_v6, %v242_v43  ;;  %v372_v56 = vmul.f32 %v1422_v6, %v243_v44  ;;  %v496_v57 = vadd.f32 %v1427_v10, %v367_v49  ;;  %v497_v58 = vadd.f32 %v1427_v10, %v368_v50  ;;  %v253_v49 = vld [vmem:[%s1410_s26 + $0x248] sm:$0xff]  ;;  %v254_v50 = vld [vmem:[%s1410_s26 + $0x250] sm:$0xff] }
  0x93   : > { %v498_v59 = vadd.f32 %v1427_v10, %v369_v51  ;;  %v499_v60 = vadd.f32 %v1427_v10, %v370_v52  ;;  %v622_v61 = vmul.f32 %v494_v53, %v236_v29  ;;  %v623_v62 = vmul.f32 %v495_v54, %v237_v30 }
  0x94   : > { %v500_v63 = vadd.f32 %v1427_v10, %v371_v55  ;;  %v501_v0 = vadd.f32 %v1427_v10, %v372_v56  ;;  %v624_v1 = vmul.f32 %v496_v57, %v238_v31  ;;  %v625_v2 = vmul.f32 %v497_v58, %v239_v36  ;;  %v255_v55 = vld [vmem:[%s1410_s26 + $0x258] sm:$0xff]  ;;  %v256_v56 = vld [vmem:[%s1410_s26 + $0x260] sm:$0xff]  ;;  %v257_v57 = vld [vmem:[%s1410_s26 + $0x268] sm:$0xff] }
  0x95   : > { %v626_v3 = vmul.f32 %v498_v59, %v240_v37  ;;  %v627_v4 = vmul.f32 %v499_v60, %v241_v38  ;;  %v751_v9 = vadd.f32 %v1429_v11, %v622_v61  ;;  %v752_v12 = vadd.f32 %v1429_v11, %v623_v62  ;;  %v258_v62 = vld [vmem:[%s1410_s26 + $0x270] sm:$0xff] }
  0x96   : > { %v628_v13 = vmul.f32 %v500_v63, %v242_v43  ;;  %v629_v14 = vmul.f32 %v501_v0, %v243_v44  ;;  %v753_v18 = vadd.f32 %v1429_v11, %v624_v1  ;;  %v754_v19 = vadd.f32 %v1429_v11, %v625_v2  ;;  %v259_v63 = vld [vmem:[%s1410_s26 + $0x278] sm:$0xff] }
  0x97   : > { %v755_v20 = vadd.f32 %v1429_v11, %v626_v3  ;;  %v756_v21 = vadd.f32 %v1429_v11, %v627_v4  ;;  %879 = vst [vmem:[%s1462_s20 + $0x1c0] sm:$0xff] %v751_v9  ;;  %880 = vst [vmem:[%s1462_s20 + $0x1c8] sm:$0xff] %v752_v12  ;;  %v373_v26 = vmul.f32 %v1422_v6, %v244_v5 }
  0x98   : > { %v757_v24 = vadd.f32 %v1429_v11, %v628_v13  ;;  %v758_v25 = vadd.f32 %v1429_v11, %v629_v14  ;;  %v374_v27 = vmul.f32 %v1422_v6, %v245_v7  ;;  %881 = vst [vmem:[%s1462_s20 + $0x1d0] sm:$0xff] %v753_v18  ;;  %882 = vst [vmem:[%s1462_s20 + $0x1d8] sm:$0xff] %v754_v19 }
  0x99   : > { %883 = vst [vmem:[%s1462_s20 + $0x1e0] sm:$0xff] %v755_v20  ;;  %884 = vst [vmem:[%s1462_s20 + $0x1e8] sm:$0xff] %v756_v21  ;;  %v375_v28 = vmul.f32 %v1422_v6, %v246_v8  ;;  %v376_v29 = vmul.f32 %v1422_v6, %v247_v15  ;;  %v377_v30 = vmul.f32 %v1422_v6, %v248_v16 }
  0x9a   : > { %v378_v31 = vmul.f32 %v1422_v6, %v249_v17  ;;  %885 = vst [vmem:[%s1462_s20 + $0x1f0] sm:$0xff] %v757_v24  ;;  %886 = vst [vmem:[%s1462_s20 + $0x1f8] sm:$0xff] %v758_v25  ;;  %v502_v32 = vadd.f32 %v1427_v10, %v373_v26  ;;  %v503_v33 = vadd.f32 %v1427_v10, %v374_v27  ;;  %v260_v27 = vld [vmem:[%s1410_s26 + $0x280] sm:$0xff] }
  0x9b   : > { %v379_v34 = vmul.f32 %v1422_v6, %v250_v22  ;;  %v380_v35 = vmul.f32 %v1422_v6, %v251_v23  ;;  %v504_v36 = vadd.f32 %v1427_v10, %v375_v28  ;;  %v505_v37 = vadd.f32 %v1427_v10, %v376_v29  ;;  %v261_v28 = vld [vmem:[%s1410_s26 + $0x288] sm:$0xff]  ;;  %v262_v29 = vld [vmem:[%s1410_s26 + $0x290] sm:$0xff] }
  0x9c   : > { %v506_v38 = vadd.f32 %v1427_v10, %v377_v30  ;;  %v507_v39 = vadd.f32 %v1427_v10, %v378_v31  ;;  %v630_v40 = vmul.f32 %v502_v32, %v244_v5  ;;  %v631_v41 = vmul.f32 %v503_v33, %v245_v7 }
  0x9d   : > { %v508_v42 = vadd.f32 %v1427_v10, %v379_v34  ;;  %v509_v43 = vadd.f32 %v1427_v10, %v380_v35  ;;  %v632_v44 = vmul.f32 %v504_v36, %v246_v8  ;;  %v633_v45 = vmul.f32 %v505_v37, %v247_v15  ;;  %v263_v34 = vld [vmem:[%s1410_s26 + $0x298] sm:$0xff]  ;;  %v264_v35 = vld [vmem:[%s1410_s26 + $0x2a0] sm:$0xff]  ;;  %v265_v36 = vld [vmem:[%s1410_s26 + $0x2a8] sm:$0xff] }
  0x9e   : > { %v634_v46 = vmul.f32 %v506_v38, %v248_v16  ;;  %v635_v47 = vmul.f32 %v507_v39, %v249_v17  ;;  %v759_v51 = vadd.f32 %v1429_v11, %v630_v40  ;;  %v760_v52 = vadd.f32 %v1429_v11, %v631_v41  ;;  %v266_v41 = vld [vmem:[%s1410_s26 + $0x2b0] sm:$0xff] }
  0x9f   : > { %v636_v53 = vmul.f32 %v508_v42, %v250_v22  ;;  %v637_v54 = vmul.f32 %v509_v43, %v251_v23  ;;  %v761_v58 = vadd.f32 %v1429_v11, %v632_v44  ;;  %v762_v59 = vadd.f32 %v1429_v11, %v633_v45  ;;  %v267_v42 = vld [vmem:[%s1410_s26 + $0x2b8] sm:$0xff] }
  0xa0   : > { %v763_v60 = vadd.f32 %v1429_v11, %v634_v46  ;;  %v764_v61 = vadd.f32 %v1429_v11, %v635_v47  ;;  %887 = vst [vmem:[%s1462_s20 + $0x200] sm:$0xff] %v759_v51  ;;  %888 = vst [vmem:[%s1462_s20 + $0x208] sm:$0xff] %v760_v52  ;;  %v381_v2 = vmul.f32 %v1422_v6, %v252_v48 }
  0xa1   : > { %v765_v0 = vadd.f32 %v1429_v11, %v636_v53  ;;  %v766_v1 = vadd.f32 %v1429_v11, %v637_v54  ;;  %v382_v3 = vmul.f32 %v1422_v6, %v253_v49  ;;  %889 = vst [vmem:[%s1462_s20 + $0x210] sm:$0xff] %v761_v58  ;;  %890 = vst [vmem:[%s1462_s20 + $0x218] sm:$0xff] %v762_v59 }
  0xa2   : > { %891 = vst [vmem:[%s1462_s20 + $0x220] sm:$0xff] %v763_v60  ;;  %892 = vst [vmem:[%s1462_s20 + $0x228] sm:$0xff] %v764_v61  ;;  %v383_v4 = vmul.f32 %v1422_v6, %v254_v50  ;;  %v384_v5 = vmul.f32 %v1422_v6, %v255_v55  ;;  %v385_v7 = vmul.f32 %v1422_v6, %v256_v56 }
  0xa3   : > { %v386_v8 = vmul.f32 %v1422_v6, %v257_v57  ;;  %893 = vst [vmem:[%s1462_s20 + $0x230] sm:$0xff] %v765_v0  ;;  %894 = vst [vmem:[%s1462_s20 + $0x238] sm:$0xff] %v766_v1  ;;  %v510_v9 = vadd.f32 %v1427_v10, %v381_v2  ;;  %v511_v12 = vadd.f32 %v1427_v10, %v382_v3  ;;  %v268_v3 = vld [vmem:[%s1410_s26 + $0x2c0] sm:$0xff] }
  0xa4   : > { %v387_v13 = vmul.f32 %v1422_v6, %v258_v62  ;;  %v388_v14 = vmul.f32 %v1422_v6, %v259_v63  ;;  %v512_v15 = vadd.f32 %v1427_v10, %v383_v4  ;;  %v513_v16 = vadd.f32 %v1427_v10, %v384_v5  ;;  %v269_v4 = vld [vmem:[%s1410_s26 + $0x2c8] sm:$0xff]  ;;  %v270_v5 = vld [vmem:[%s1410_s26 + $0x2d0] sm:$0xff] }
  0xa5   : > { %v514_v17 = vadd.f32 %v1427_v10, %v385_v7  ;;  %v515_v18 = vadd.f32 %v1427_v10, %v386_v8  ;;  %v638_v19 = vmul.f32 %v510_v9, %v252_v48  ;;  %v639_v20 = vmul.f32 %v511_v12, %v253_v49 }
  0xa6   : > { %v516_v21 = vadd.f32 %v1427_v10, %v387_v13  ;;  %v517_v22 = vadd.f32 %v1427_v10, %v388_v14  ;;  %v640_v23 = vmul.f32 %v512_v15, %v254_v50  ;;  %v641_v24 = vmul.f32 %v513_v16, %v255_v55  ;;  %v271_v13 = vld [vmem:[%s1410_s26 + $0x2d8] sm:$0xff]  ;;  %v272_v14 = vld [vmem:[%s1410_s26 + $0x2e0] sm:$0xff]  ;;  %v273_v15 = vld [vmem:[%s1410_s26 + $0x2e8] sm:$0xff] }
  0xa7   : > { %v642_v25 = vmul.f32 %v514_v17, %v256_v56  ;;  %v643_v26 = vmul.f32 %v515_v18, %v257_v57  ;;  %v767_v30 = vadd.f32 %v1429_v11, %v638_v19  ;;  %v768_v31 = vadd.f32 %v1429_v11, %v639_v20  ;;  %v274_v20 = vld [vmem:[%s1410_s26 + $0x2f0] sm:$0xff] }
  0xa8   : > { %v644_v32 = vmul.f32 %v516_v21, %v258_v62  ;;  %v645_v33 = vmul.f32 %v517_v22, %v259_v63  ;;  %v769_v37 = vadd.f32 %v1429_v11, %v640_v23  ;;  %v770_v38 = vadd.f32 %v1429_v11, %v641_v24  ;;  %v275_v21 = vld [vmem:[%s1410_s26 + $0x2f8] sm:$0xff] }
  0xa9   : > { %v771_v39 = vadd.f32 %v1429_v11, %v642_v25  ;;  %v772_v40 = vadd.f32 %v1429_v11, %v643_v26  ;;  %895 = vst [vmem:[%s1462_s20 + $0x240] sm:$0xff] %v767_v30  ;;  %896 = vst [vmem:[%s1462_s20 + $0x248] sm:$0xff] %v768_v31  ;;  %v389_v45 = vmul.f32 %v1422_v6, %v260_v27 }
  0xaa   : > { %v773_v43 = vadd.f32 %v1429_v11, %v644_v32  ;;  %v774_v44 = vadd.f32 %v1429_v11, %v645_v33  ;;  %v390_v46 = vmul.f32 %v1422_v6, %v261_v28  ;;  %897 = vst [vmem:[%s1462_s20 + $0x250] sm:$0xff] %v769_v37  ;;  %898 = vst [vmem:[%s1462_s20 + $0x258] sm:$0xff] %v770_v38 }
  0xab   : > { %899 = vst [vmem:[%s1462_s20 + $0x260] sm:$0xff] %v771_v39  ;;  %900 = vst [vmem:[%s1462_s20 + $0x268] sm:$0xff] %v772_v40  ;;  %v391_v47 = vmul.f32 %v1422_v6, %v262_v29  ;;  %v392_v48 = vmul.f32 %v1422_v6, %v263_v34  ;;  %v393_v49 = vmul.f32 %v1422_v6, %v264_v35 }
  0xac   : > { %v394_v50 = vmul.f32 %v1422_v6, %v265_v36  ;;  %901 = vst [vmem:[%s1462_s20 + $0x270] sm:$0xff] %v773_v43  ;;  %902 = vst [vmem:[%s1462_s20 + $0x278] sm:$0xff] %v774_v44  ;;  %v518_v51 = vadd.f32 %v1427_v10, %v389_v45  ;;  %v519_v52 = vadd.f32 %v1427_v10, %v390_v46  ;;  %v276_v46 = vld [vmem:[%s1410_s26 + $0x300] sm:$0xff] }
  0xad   : > { %v395_v53 = vmul.f32 %v1422_v6, %v266_v41  ;;  %v396_v54 = vmul.f32 %v1422_v6, %v267_v42  ;;  %v520_v55 = vadd.f32 %v1427_v10, %v391_v47  ;;  %v521_v56 = vadd.f32 %v1427_v10, %v392_v48  ;;  %v277_v47 = vld [vmem:[%s1410_s26 + $0x308] sm:$0xff]  ;;  %v278_v48 = vld [vmem:[%s1410_s26 + $0x310] sm:$0xff] }
  0xae   : > { %v522_v57 = vadd.f32 %v1427_v10, %v393_v49  ;;  %v523_v58 = vadd.f32 %v1427_v10, %v394_v50  ;;  %v646_v59 = vmul.f32 %v518_v51, %v260_v27  ;;  %v647_v60 = vmul.f32 %v519_v52, %v261_v28 }
  0xaf   : > { %v524_v61 = vadd.f32 %v1427_v10, %v395_v53  ;;  %v525_v62 = vadd.f32 %v1427_v10, %v396_v54  ;;  %v648_v63 = vmul.f32 %v520_v55, %v262_v29  ;;  %v649_v0 = vmul.f32 %v521_v56, %v263_v34  ;;  %v279_v53 = vld [vmem:[%s1410_s26 + $0x318] sm:$0xff]  ;;  %v280_v54 = vld [vmem:[%s1410_s26 + $0x320] sm:$0xff]  ;;  %v281_v55 = vld [vmem:[%s1410_s26 + $0x328] sm:$0xff] }
  0xb0   : > { %v650_v1 = vmul.f32 %v522_v57, %v264_v35  ;;  %v651_v2 = vmul.f32 %v523_v58, %v265_v36  ;;  %v775_v7 = vadd.f32 %v1429_v11, %v646_v59  ;;  %v776_v8 = vadd.f32 %v1429_v11, %v647_v60  ;;  %v282_v60 = vld [vmem:[%s1410_s26 + $0x330] sm:$0xff] }
  0xb1   : > { %v652_v9 = vmul.f32 %v524_v61, %v266_v41  ;;  %v653_v12 = vmul.f32 %v525_v62, %v267_v42  ;;  %v777_v16 = vadd.f32 %v1429_v11, %v648_v63  ;;  %v778_v17 = vadd.f32 %v1429_v11, %v649_v0  ;;  %v283_v61 = vld [vmem:[%s1410_s26 + $0x338] sm:$0xff] }
  0xb2   : > { %v779_v18 = vadd.f32 %v1429_v11, %v650_v1  ;;  %v780_v19 = vadd.f32 %v1429_v11, %v651_v2  ;;  %903 = vst [vmem:[%s1462_s20 + $0x280] sm:$0xff] %v775_v7  ;;  %904 = vst [vmem:[%s1462_s20 + $0x288] sm:$0xff] %v776_v8  ;;  %v397_v24 = vmul.f32 %v1422_v6, %v268_v3 }
  0xb3   : > { %v781_v22 = vadd.f32 %v1429_v11, %v652_v9  ;;  %v782_v23 = vadd.f32 %v1429_v11, %v653_v12  ;;  %v398_v25 = vmul.f32 %v1422_v6, %v269_v4  ;;  %905 = vst [vmem:[%s1462_s20 + $0x290] sm:$0xff] %v777_v16  ;;  %906 = vst [vmem:[%s1462_s20 + $0x298] sm:$0xff] %v778_v17 }
  0xb4   : > { %907 = vst [vmem:[%s1462_s20 + $0x2a0] sm:$0xff] %v779_v18  ;;  %908 = vst [vmem:[%s1462_s20 + $0x2a8] sm:$0xff] %v780_v19  ;;  %v399_v26 = vmul.f32 %v1422_v6, %v270_v5  ;;  %v400_v27 = vmul.f32 %v1422_v6, %v271_v13  ;;  %v401_v28 = vmul.f32 %v1422_v6, %v272_v14 }
  0xb5   : > { %v402_v29 = vmul.f32 %v1422_v6, %v273_v15  ;;  %909 = vst [vmem:[%s1462_s20 + $0x2b0] sm:$0xff] %v781_v22  ;;  %910 = vst [vmem:[%s1462_s20 + $0x2b8] sm:$0xff] %v782_v23  ;;  %v526_v30 = vadd.f32 %v1427_v10, %v397_v24  ;;  %v527_v31 = vadd.f32 %v1427_v10, %v398_v25  ;;  %v284_v25 = vld [vmem:[%s1410_s26 + $0x340] sm:$0xff] }
  0xb6   : > { %v403_v32 = vmul.f32 %v1422_v6, %v274_v20  ;;  %v404_v33 = vmul.f32 %v1422_v6, %v275_v21  ;;  %v528_v34 = vadd.f32 %v1427_v10, %v399_v26  ;;  %v529_v35 = vadd.f32 %v1427_v10, %v400_v27  ;;  %v285_v26 = vld [vmem:[%s1410_s26 + $0x348] sm:$0xff]  ;;  %v286_v27 = vld [vmem:[%s1410_s26 + $0x350] sm:$0xff] }
  0xb7   : > { %v530_v36 = vadd.f32 %v1427_v10, %v401_v28  ;;  %v531_v37 = vadd.f32 %v1427_v10, %v402_v29  ;;  %v654_v38 = vmul.f32 %v526_v30, %v268_v3  ;;  %v655_v39 = vmul.f32 %v527_v31, %v269_v4 }
  0xb8   : > { %v532_v40 = vadd.f32 %v1427_v10, %v403_v32  ;;  %v533_v41 = vadd.f32 %v1427_v10, %v404_v33  ;;  %v656_v42 = vmul.f32 %v528_v34, %v270_v5  ;;  %v657_v43 = vmul.f32 %v529_v35, %v271_v13  ;;  %v287_v32 = vld [vmem:[%s1410_s26 + $0x358] sm:$0xff]  ;;  %v288_v33 = vld [vmem:[%s1410_s26 + $0x360] sm:$0xff]  ;;  %v289_v34 = vld [vmem:[%s1410_s26 + $0x368] sm:$0xff] }
  0xb9   : > { %v658_v44 = vmul.f32 %v530_v36, %v272_v14  ;;  %v659_v45 = vmul.f32 %v531_v37, %v273_v15  ;;  %v783_v49 = vadd.f32 %v1429_v11, %v654_v38  ;;  %v784_v50 = vadd.f32 %v1429_v11, %v655_v39  ;;  %v290_v39 = vld [vmem:[%s1410_s26 + $0x370] sm:$0xff] }
  0xba   : > { %v660_v51 = vmul.f32 %v532_v40, %v274_v20  ;;  %v661_v52 = vmul.f32 %v533_v41, %v275_v21  ;;  %v785_v56 = vadd.f32 %v1429_v11, %v656_v42  ;;  %v786_v57 = vadd.f32 %v1429_v11, %v657_v43  ;;  %v291_v40 = vld [vmem:[%s1410_s26 + $0x378] sm:$0xff] }
  0xbb   : > { %v787_v58 = vadd.f32 %v1429_v11, %v658_v44  ;;  %v788_v59 = vadd.f32 %v1429_v11, %v659_v45  ;;  %911 = vst [vmem:[%s1462_s20 + $0x2c0] sm:$0xff] %v783_v49  ;;  %912 = vst [vmem:[%s1462_s20 + $0x2c8] sm:$0xff] %v784_v50  ;;  %v405_v0 = vmul.f32 %v1422_v6, %v276_v46 }
  0xbc   : > { %v789_v62 = vadd.f32 %v1429_v11, %v660_v51  ;;  %v790_v63 = vadd.f32 %v1429_v11, %v661_v52  ;;  %v406_v1 = vmul.f32 %v1422_v6, %v277_v47  ;;  %913 = vst [vmem:[%s1462_s20 + $0x2d0] sm:$0xff] %v785_v56  ;;  %914 = vst [vmem:[%s1462_s20 + $0x2d8] sm:$0xff] %v786_v57 }
  0xbd   : > { %915 = vst [vmem:[%s1462_s20 + $0x2e0] sm:$0xff] %v787_v58  ;;  %916 = vst [vmem:[%s1462_s20 + $0x2e8] sm:$0xff] %v788_v59  ;;  %v407_v2 = vmul.f32 %v1422_v6, %v278_v48  ;;  %v408_v3 = vmul.f32 %v1422_v6, %v279_v53  ;;  %v409_v4 = vmul.f32 %v1422_v6, %v280_v54 }
  0xbe   : > { %v410_v5 = vmul.f32 %v1422_v6, %v281_v55  ;;  %917 = vst [vmem:[%s1462_s20 + $0x2f0] sm:$0xff] %v789_v62  ;;  %918 = vst [vmem:[%s1462_s20 + $0x2f8] sm:$0xff] %v790_v63  ;;  %v534_v7 = vadd.f32 %v1427_v10, %v405_v0  ;;  %v535_v8 = vadd.f32 %v1427_v10, %v406_v1  ;;  %v292_v1 = vld [vmem:[%s1410_s26 + $0x380] sm:$0xff] }
  0xbf   : > { %v411_v9 = vmul.f32 %v1422_v6, %v282_v60  ;;  %v412_v12 = vmul.f32 %v1422_v6, %v283_v61  ;;  %v536_v13 = vadd.f32 %v1427_v10, %v407_v2  ;;  %v537_v14 = vadd.f32 %v1427_v10, %v408_v3  ;;  %v293_v2 = vld [vmem:[%s1410_s26 + $0x388] sm:$0xff]  ;;  %v294_v3 = vld [vmem:[%s1410_s26 + $0x390] sm:$0xff] }
  0xc0   : > { %v538_v15 = vadd.f32 %v1427_v10, %v409_v4  ;;  %v539_v16 = vadd.f32 %v1427_v10, %v410_v5  ;;  %v662_v17 = vmul.f32 %v534_v7, %v276_v46  ;;  %v663_v18 = vmul.f32 %v535_v8, %v277_v47 }
  0xc1   : > { %v540_v19 = vadd.f32 %v1427_v10, %v411_v9  ;;  %v541_v20 = vadd.f32 %v1427_v10, %v412_v12  ;;  %v664_v21 = vmul.f32 %v536_v13, %v278_v48  ;;  %v665_v22 = vmul.f32 %v537_v14, %v279_v53  ;;  %v295_v9 = vld [vmem:[%s1410_s26 + $0x398] sm:$0xff]  ;;  %v296_v12 = vld [vmem:[%s1410_s26 + $0x3a0] sm:$0xff]  ;;  %v297_v13 = vld [vmem:[%s1410_s26 + $0x3a8] sm:$0xff] }
  0xc2   : > { %v666_v23 = vmul.f32 %v538_v15, %v280_v54  ;;  %v667_v24 = vmul.f32 %v539_v16, %v281_v55  ;;  %v791_v28 = vadd.f32 %v1429_v11, %v662_v17  ;;  %v792_v29 = vadd.f32 %v1429_v11, %v663_v18  ;;  %v298_v18 = vld [vmem:[%s1410_s26 + $0x3b0] sm:$0xff] }
  0xc3   : > { %v668_v30 = vmul.f32 %v540_v19, %v282_v60  ;;  %v669_v31 = vmul.f32 %v541_v20, %v283_v61  ;;  %v793_v35 = vadd.f32 %v1429_v11, %v664_v21  ;;  %v794_v36 = vadd.f32 %v1429_v11, %v665_v22  ;;  %v299_v19 = vld [vmem:[%s1410_s26 + $0x3b8] sm:$0xff] }
  0xc4   : > { %v795_v37 = vadd.f32 %v1429_v11, %v666_v23  ;;  %v796_v38 = vadd.f32 %v1429_v11, %v667_v24  ;;  %919 = vst [vmem:[%s1462_s20 + $0x300] sm:$0xff] %v791_v28  ;;  %920 = vst [vmem:[%s1462_s20 + $0x308] sm:$0xff] %v792_v29  ;;  %v413_v43 = vmul.f32 %v1422_v6, %v284_v25 }
  0xc5   : > { %v797_v41 = vadd.f32 %v1429_v11, %v668_v30  ;;  %v798_v42 = vadd.f32 %v1429_v11, %v669_v31  ;;  %v414_v44 = vmul.f32 %v1422_v6, %v285_v26  ;;  %921 = vst [vmem:[%s1462_s20 + $0x310] sm:$0xff] %v793_v35  ;;  %922 = vst [vmem:[%s1462_s20 + $0x318] sm:$0xff] %v794_v36 }
  0xc6   : > { %923 = vst [vmem:[%s1462_s20 + $0x320] sm:$0xff] %v795_v37  ;;  %924 = vst [vmem:[%s1462_s20 + $0x328] sm:$0xff] %v796_v38  ;;  %v415_v45 = vmul.f32 %v1422_v6, %v286_v27  ;;  %v416_v46 = vmul.f32 %v1422_v6, %v287_v32  ;;  %v417_v47 = vmul.f32 %v1422_v6, %v288_v33 }
  0xc7   : > { %v418_v48 = vmul.f32 %v1422_v6, %v289_v34  ;;  %925 = vst [vmem:[%s1462_s20 + $0x330] sm:$0xff] %v797_v41  ;;  %926 = vst [vmem:[%s1462_s20 + $0x338] sm:$0xff] %v798_v42  ;;  %v542_v49 = vadd.f32 %v1427_v10, %v413_v43  ;;  %v543_v50 = vadd.f32 %v1427_v10, %v414_v44  ;;  %v300_v44 = vld [vmem:[%s1410_s26 + $0x3c0] sm:$0xff] }
  0xc8   : > { %v419_v51 = vmul.f32 %v1422_v6, %v290_v39  ;;  %v420_v52 = vmul.f32 %v1422_v6, %v291_v40  ;;  %v544_v53 = vadd.f32 %v1427_v10, %v415_v45  ;;  %v545_v54 = vadd.f32 %v1427_v10, %v416_v46  ;;  %v301_v45 = vld [vmem:[%s1410_s26 + $0x3c8] sm:$0xff]  ;;  %v302_v46 = vld [vmem:[%s1410_s26 + $0x3d0] sm:$0xff] }
  0xc9   : > { %v546_v55 = vadd.f32 %v1427_v10, %v417_v47  ;;  %v547_v56 = vadd.f32 %v1427_v10, %v418_v48  ;;  %v670_v57 = vmul.f32 %v542_v49, %v284_v25  ;;  %v671_v58 = vmul.f32 %v543_v50, %v285_v26 }
  0xca   : > { %v548_v59 = vadd.f32 %v1427_v10, %v419_v51  ;;  %v549_v60 = vadd.f32 %v1427_v10, %v420_v52  ;;  %v672_v61 = vmul.f32 %v544_v53, %v286_v27  ;;  %v673_v62 = vmul.f32 %v545_v54, %v287_v32  ;;  %v303_v51 = vld [vmem:[%s1410_s26 + $0x3d8] sm:$0xff]  ;;  %v304_v52 = vld [vmem:[%s1410_s26 + $0x3e0] sm:$0xff]  ;;  %v305_v53 = vld [vmem:[%s1410_s26 + $0x3e8] sm:$0xff] }
  0xcb   : > { %v674_v63 = vmul.f32 %v546_v55, %v288_v33  ;;  %v675_v0 = vmul.f32 %v547_v56, %v289_v34  ;;  %v799_v4 = vadd.f32 %v1429_v11, %v670_v57  ;;  %v800_v5 = vadd.f32 %v1429_v11, %v671_v58  ;;  %v306_v58 = vld [vmem:[%s1410_s26 + $0x3f0] sm:$0xff] }
  0xcc   : > { %v676_v7 = vmul.f32 %v548_v59, %v290_v39  ;;  %v677_v8 = vmul.f32 %v549_v60, %v291_v40  ;;  %v801_v14 = vadd.f32 %v1429_v11, %v672_v61  ;;  %v802_v15 = vadd.f32 %v1429_v11, %v673_v62  ;;  %v307_v59 = vld [vmem:[%s1410_s26 + $0x3f8] sm:$0xff] }
  0xcd   : > { %v803_v16 = vadd.f32 %v1429_v11, %v674_v63  ;;  %v804_v17 = vadd.f32 %v1429_v11, %v675_v0  ;;  %927 = vst [vmem:[%s1462_s20 + $0x340] sm:$0xff] %v799_v4  ;;  %928 = vst [vmem:[%s1462_s20 + $0x348] sm:$0xff] %v800_v5  ;;  %v421_v22 = vmul.f32 %v1422_v6, %v292_v1 }
  0xce   : > { %v805_v20 = vadd.f32 %v1429_v11, %v676_v7  ;;  %v806_v21 = vadd.f32 %v1429_v11, %v677_v8  ;;  %v422_v23 = vmul.f32 %v1422_v6, %v293_v2  ;;  %929 = vst [vmem:[%s1462_s20 + $0x350] sm:$0xff] %v801_v14  ;;  %930 = vst [vmem:[%s1462_s20 + $0x358] sm:$0xff] %v802_v15 }
  0xcf   : > { %931 = vst [vmem:[%s1462_s20 + $0x360] sm:$0xff] %v803_v16  ;;  %932 = vst [vmem:[%s1462_s20 + $0x368] sm:$0xff] %v804_v17  ;;  %v423_v24 = vmul.f32 %v1422_v6, %v294_v3  ;;  %v424_v25 = vmul.f32 %v1422_v6, %v295_v9  ;;  %v425_v26 = vmul.f32 %v1422_v6, %v296_v12 }
  0xd0   : > { %v426_v27 = vmul.f32 %v1422_v6, %v297_v13  ;;  %933 = vst [vmem:[%s1462_s20 + $0x370] sm:$0xff] %v805_v20  ;;  %934 = vst [vmem:[%s1462_s20 + $0x378] sm:$0xff] %v806_v21  ;;  %v550_v28 = vadd.f32 %v1427_v10, %v421_v22  ;;  %v551_v29 = vadd.f32 %v1427_v10, %v422_v23 }
  0xd1   : > { %v427_v30 = vmul.f32 %v1422_v6, %v298_v18  ;;  %v428_v31 = vmul.f32 %v1422_v6, %v299_v19  ;;  %v552_v32 = vadd.f32 %v1427_v10, %v423_v24  ;;  %v553_v33 = vadd.f32 %v1427_v10, %v424_v25 }
  0xd2   : > { %v554_v34 = vadd.f32 %v1427_v10, %v425_v26  ;;  %v555_v35 = vadd.f32 %v1427_v10, %v426_v27  ;;  %v678_v36 = vmul.f32 %v550_v28, %v292_v1  ;;  %v679_v37 = vmul.f32 %v551_v29, %v293_v2 }
  0xd3   : > { %v556_v38 = vadd.f32 %v1427_v10, %v427_v30  ;;  %v557_v39 = vadd.f32 %v1427_v10, %v428_v31  ;;  %v680_v40 = vmul.f32 %v552_v32, %v294_v3  ;;  %v681_v41 = vmul.f32 %v553_v33, %v295_v9 }
  0xd4   : > { %v682_v42 = vmul.f32 %v554_v34, %v296_v12  ;;  %v683_v43 = vmul.f32 %v555_v35, %v297_v13  ;;  %v807_v47 = vadd.f32 %v1429_v11, %v678_v36  ;;  %v808_v48 = vadd.f32 %v1429_v11, %v679_v37 }
  0xd5   : > { %v684_v49 = vmul.f32 %v556_v38, %v298_v18  ;;  %v685_v50 = vmul.f32 %v557_v39, %v299_v19  ;;  %v809_v54 = vadd.f32 %v1429_v11, %v680_v40  ;;  %v810_v55 = vadd.f32 %v1429_v11, %v681_v41 }
  0xd6   : > { %v811_v56 = vadd.f32 %v1429_v11, %v682_v42  ;;  %v812_v57 = vadd.f32 %v1429_v11, %v683_v43  ;;  %935 = vst [vmem:[%s1462_s20 + $0x380] sm:$0xff] %v807_v47  ;;  %936 = vst [vmem:[%s1462_s20 + $0x388] sm:$0xff] %v808_v48  ;;  %v429_v62 = vmul.f32 %v1422_v6, %v300_v44 }
  0xd7   : > { %v813_v60 = vadd.f32 %v1429_v11, %v684_v49  ;;  %v814_v61 = vadd.f32 %v1429_v11, %v685_v50  ;;  %v430_v63 = vmul.f32 %v1422_v6, %v301_v45  ;;  %937 = vst [vmem:[%s1462_s20 + $0x390] sm:$0xff] %v809_v54  ;;  %938 = vst [vmem:[%s1462_s20 + $0x398] sm:$0xff] %v810_v55 }
  0xd8   : > { %939 = vst [vmem:[%s1462_s20 + $0x3a0] sm:$0xff] %v811_v56  ;;  %940 = vst [vmem:[%s1462_s20 + $0x3a8] sm:$0xff] %v812_v57  ;;  %v431_v0 = vmul.f32 %v1422_v6, %v302_v46  ;;  %v432_v1 = vmul.f32 %v1422_v6, %v303_v51  ;;  %v433_v2 = vmul.f32 %v1422_v6, %v304_v52 }
  0xd9   : > { %v434_v3 = vmul.f32 %v1422_v6, %v305_v53  ;;  %941 = vst [vmem:[%s1462_s20 + $0x3b0] sm:$0xff] %v813_v60  ;;  %942 = vst [vmem:[%s1462_s20 + $0x3b8] sm:$0xff] %v814_v61  ;;  %v558_v4 = vadd.f32 %v1427_v10, %v429_v62  ;;  %v559_v5 = vadd.f32 %v1427_v10, %v430_v63 }
  0xda   : > { %v435_v7 = vmul.f32 %v1422_v6, %v306_v58  ;;  %v436_v8 = vmul.f32 %v1422_v6, %v307_v59  ;;  %v560_v9 = vadd.f32 %v1427_v10, %v431_v0  ;;  %v561_v12 = vadd.f32 %v1427_v10, %v432_v1 }
  0xdb   : > { %v562_v13 = vadd.f32 %v1427_v10, %v433_v2  ;;  %v563_v14 = vadd.f32 %v1427_v10, %v434_v3  ;;  %v686_v15 = vmul.f32 %v558_v4, %v300_v44  ;;  %v687_v16 = vmul.f32 %v559_v5, %v301_v45 }
  0xdc   : > { %v564_v17 = vadd.f32 %v1427_v10, %v435_v7  ;;  %v565_v18 = vadd.f32 %v1427_v10, %v436_v8  ;;  %v688_v19 = vmul.f32 %v560_v9, %v302_v46  ;;  %v689_v6 = vmul.f32 %v561_v12, %v303_v51 }
  0xdd   : > { %v690_v20 = vmul.f32 %v562_v13, %v304_v52  ;;  %v691_v21 = vmul.f32 %v563_v14, %v305_v53  ;;  %v815_v22 = vadd.f32 %v1429_v11, %v686_v15  ;;  %v816_v23 = vadd.f32 %v1429_v11, %v687_v16 }
  0xde   : > { %v692_v24 = vmul.f32 %v564_v17, %v306_v58  ;;  %v693_v25 = vmul.f32 %v565_v18, %v307_v59  ;;  %v817_v10 = vadd.f32 %v1429_v11, %v688_v19  ;;  %v818_v26 = vadd.f32 %v1429_v11, %v689_v6 }
  0xdf   : > { %v819_v27 = vadd.f32 %v1429_v11, %v690_v20  ;;  %v820_v28 = vadd.f32 %v1429_v11, %v691_v21  ;;  %943 = vst [vmem:[%s1462_s20 + $0x3c0] sm:$0xff] %v815_v22  ;;  %944 = vst [vmem:[%s1462_s20 + $0x3c8] sm:$0xff] %v816_v23 }
  0xe0   : > { %v821_v29 = vadd.f32 %v1429_v11, %v692_v24  ;;  %v822_v30 = vadd.f32 %v1429_v11, %v693_v25  ;;  %945 = vst [vmem:[%s1462_s20 + $0x3d0] sm:$0xff] %v817_v10  ;;  %946 = vst [vmem:[%s1462_s20 + $0x3d8] sm:$0xff] %v818_v26 }
  0xe1   : > { %947 = vst [vmem:[%s1462_s20 + $0x3e0] sm:$0xff] %v819_v27  ;;  %948 = vst [vmem:[%s1462_s20 + $0x3e8] sm:$0xff] %v820_v28 }
  0xe2   : > { %949 = vst [vmem:[%s1462_s20 + $0x3f0] sm:$0xff] %v821_v29  ;;  %950 = vst [vmem:[%s1462_s20 + $0x3f8] sm:$0xff] %v822_v30 }
  0xe3   : > { %1192 = shalt.err (!%p1189_p6)
}
  0xe4   : > { %s1193_s16 = scalar_lea.hbm %s2061_s6, 16384  ;;  %s1197_s25 = scalar_lea.hbm %s2118_s2, 131072 }
  0xe5   : > { %p1194_p7 = scmp.ne.s32.totalorder %s2061_s6, %s1193_s16  ;;  %p1198_p4 = scmp.lt.u32.totalorder %s2061_s6, %s2118_s2 }
  0xe6   : > { %p1199_p2 = scmp.lt.u32.totalorder %s1197_s25, %s1193_s16  ;;  %p1201_p12 = scmp.lt.u32.totalorder %s1193_s16, %s2061_s6 }
  0xe7   : > { %p1195_p8 = pnand %p1194_p7, %p2131_p13 }
  0xe8   : > { %p1200_p11 = por %p1199_p2, %p1198_p4 }
  0xe9   : > { %p1196_p9 = pneg %p1195_p8 }
  0xea   : > { %p1202_p0 = por %p1201_p12, %p1200_p11 }
  0xec   : > { %p1203_p3 = pnand %p1202_p0, %p1196_p9 }
  0xee   : > { %1206 = shalt.err (!%p1203_p3)
}
  0xef   : > { %s1256_s19 = smov 1024   ;;  %s1257_s29 = smov 64  }
  0xf0   : > { %1081 = dma.vmem_to_hbm [thread:$0]  (%p2131_p13), %s2063_s4, 16384, %s2061_s6, %s952_s7, %s1256_s19, %s1256_s19, %s1257_s29  }
  0xf1 PF: > { %p1098_p10 = scmp.ge.s32.totalorder %s1249_s12, 2  ;;  %s981_s20 = sand.u32 1, %s1237_s9  }
  0xf2   : > { %p2132_p5 = scmp.ne.s32.totalorder %s2125_s22, 0  ;;  %s982_s30 = scalar_lea.sflag [#allocation4], %s981_s20 }
  0xf4   : > { %p1092_p1 = pnand %p1098_p10, %p2132_p5 }
  0xf6   : > { %1232 = dma.done.wait (!%p1092_p1), %s982_s30, 16384  }
  0xf7   : > { %1234 = vsyncadd (!%p1092_p1), %s982_s30, 4294950912  ;;  %p16_p6 = scmp.ge.s32.totalorder %s1298_s15, 10   ;;  %s2133_s9 = smov %s1241_s10 }
  0xf8   : > { %s2134_s10 = smov %s1245_s11  ;;  %s2135_s11 = smov %s1310_s18 }
  0xf9   : > { %s2136_s12 = smov %s1298_s15  ;;  %18 = sbr.rel (!%p16_p6) target bundleno = 6 (0x6), region = 78 }
 0x100   :  { %987 = vsyncpa [#allocation3], 1 }
 0x101   :  { %989 = vsyncpa [#allocation3 + $0x1], 1 }
 0x102   :  { %990 = vsyncpa [#allocation4], 1 }
 0x103   :  { %992 = vsyncpa [#allocation4 + $0x1], 1 }
 0x104   :  { %993 = vsyncpa [#allocation5], 1 }
 0x105   :  { %995 = vsyncpa [#allocation5 + $0x1], 1 }

</bundles_post_ra>
